<compile_context>
chip_gen: v7x
topology: tpu7x:2x2x1
jax: 0.10.0
libtpu: 0.0.40
codegen_flags: <defaults>
</compile_context>

<pallas_src>
import jax
import jax.numpy as jnp
from jax import lax
from jax.experimental import pallas as pl
from jax.experimental.pallas import tpu as pltpu


def s2v_encoder_kernel(x_ref, row_ref, col_ref, w1_ref, w2_ref, v3_ref, out_ref):
    """All `hop` message-passing layers for one graph in a single invocation.

    x_ref   : [N, F]        node features (f32)
    row_ref : [1, E]        edge target index (aggregation destination), int32
    col_ref : [1, E]        edge source index (message source), int32
    w1_ref  : [F, hop*H]    theta_1 weights, all hops concatenated on the output axis
    w2_ref  : [hop, H, H]   theta_2 weights, stored [in, out]
    v3_ref  : [hop, 1, H]   folded edge branch: relu(theta_4(1)) @ W3 (precomputed)
    out_ref : [N, H]        final node embedding
    """
    n = x_ref.shape[0]
    e = row_ref.shape[1]
    h_dim = out_ref.shape[1]
    hops = w2_ref.shape[0]

    # ---- dense aggregation operator, built once and reused by every hop ----
    # r_t[i, e] = 1 iff row[e] == i ; c_t[j, e] = 1 iff col[e] == j   (both [N, E],
    # lane-dense over E, bf16 is exact for 0/1).  Contracting the shared E axis:
    #   adj[i, j] = #edges(row=i, col=j)   (exact integers, f32 accumulation)
    # so the per-edge scatter-add  aggr(h[col], row)  becomes  adj @ h.
    node_iota = lax.broadcasted_iota(jnp.int32, (n, e), 0)
    r_t = (node_iota == row_ref[...]).astype(jnp.bfloat16)            # [N, E]
    c_t = (node_iota == col_ref[...]).astype(jnp.bfloat16)            # [N, E]
    adj = lax.dot_general(r_t, c_t, (((1,), (1,)), ((), ())),
                          preferred_element_type=jnp.float32)         # [N, N]
    deg = jnp.sum(adj, axis=1, keepdims=True)                         # [N, 1] = #edges(row=i)

    # theta_1 for every hop in a single wide matmul (K = F is tiny; fusing
    # across hops amortizes the MXU weight load/drain).
    nfe_all = jnp.dot(x_ref[...], w1_ref[...],
                      preferred_element_type=jnp.float32)             # [N, hop*H]

    h = jnp.zeros((n, h_dim), jnp.float32)
    for l in range(hops):                                             # static hop count
        # Edge branch is rank-1 and was folded outside the kernel:
        #   theta_3(aggr(relu(theta_4(ones)), row)) == deg ⊗ v3[l]
        pre = nfe_all[:, l * h_dim:(l + 1) * h_dim] + deg * v3_ref[l]  # [N, H]
        if l > 0:
            # Hop 0: node_embedding == 0 and theta_2 has no bias, so this
            # contribution is exactly zero -> skip two matmuls.
            n_aggr = jnp.dot(adj, h, preferred_element_type=jnp.float32)   # [N, H]
            pre = pre + jnp.dot(n_aggr, w2_ref[l],
                                preferred_element_type=jnp.float32)
        h = jnp.maximum(pre, 0.0)
        # Dropout(p): identity in eval/inference mode.

    out_ref[...] = h.astype(out_ref.dtype)


def s2v_encoder_forward(x, edge_index, params):
    """x: [N, F] f32, edge_index: [2, E] int, params: stacked (w1, w2, w3, w4)."""
    w1, w2, w3, w4 = params
    n, f = x.shape
    e = edge_index.shape[1]
    hop, _, h_dim = w1.shape

    row = edge_index[0].astype(jnp.int32).reshape(1, e)
    col = edge_index[1].astype(jnp.int32).reshape(1, e)

    hp = jax.lax.Precision.HIGHEST
    # Exact algebraic fold of the edge branch (edge_attr == ones(E, 1)):
    #   theta_3(aggr(relu(theta_4(1)), row)) = deg ⊗ (relu(w4) @ W3)
    v3 = jnp.einsum('lih,lho->lio', jnp.maximum(w4, 0.0), w3, precision=hp)  # [hop, 1, H]
    # theta_1 weights for all hops packed on the output axis: [F, hop*H]
    w1_flat = jnp.transpose(w1, (1, 0, 2)).reshape(f, hop * h_dim)

    flops = (2 * n * e * n                                              # adjacency build
             + 2 * n * f * hop * h_dim                                  # fused theta_1
             + (hop - 1) * (2 * n * n * h_dim + 2 * n * h_dim * h_dim))  # aggr + theta_2
    bytes_accessed = 4 * (x.size + w1_flat.size + w2.size + v3.size + n * h_dim) \
        + 4 * (row.size + col.size)

    # Live VMEM: inputs/outputs + bf16 one-hots + adj + nfe_all + a few [N,H] temps.
    vmem_bytes = (bytes_accessed
                  + 2 * 2 * n * e                      # r_t, c_t (bf16)
                  + 4 * (n * n + n * hop * h_dim + 3 * n * h_dim))
    vmem_limit = int(min(64 * 1024 * 1024, max(4 * vmem_bytes, 16 * 1024 * 1024)))

    vmem = pl.BlockSpec(memory_space=pltpu.MemorySpace.VMEM)
    return pl.pallas_call(
        s2v_encoder_kernel,
        out_shape=jax.ShapeDtypeStruct((n, h_dim), jnp.float32),
        in_specs=[vmem] * 6,
        out_specs=vmem,
        compiler_params=pltpu.CompilerParams(vmem_limit_bytes=vmem_limit),
        cost_estimate=pl.CostEstimate(flops=flops, transcendentals=0,
                                      bytes_accessed=bytes_accessed),
    )(x, row, col, w1_flat, w2, v3)


def init_params(key, node_feature_dim, hidden_dim, hop=3):
    """Deterministic synthetic theta_1..theta_4 per hop, stored [in, out], stacked on hop."""
    keys = jax.random.split(key, 4 * hop)

    def lin(k, fan_in, fan_out):
        bound = 1.0 / jnp.sqrt(fan_in)
        return jax.random.uniform(k, (fan_in, fan_out), jnp.float32, -bound, bound)

    w1 = jnp.stack([lin(keys[4 * l + 0], node_feature_dim, hidden_dim) for l in range(hop)])
    w2 = jnp.stack([lin(keys[4 * l + 1], hidden_dim, hidden_dim) for l in range(hop)])
    w3 = jnp.stack([lin(keys[4 * l + 2], hidden_dim, hidden_dim) for l in range(hop)])
    w4 = jnp.stack([lin(keys[4 * l + 3], 1, hidden_dim) for l in range(hop)])
    return (w1, w2, w3, w4)


def s2v_encoder_reference(x, edge_index, params):
    """Plain-JAX reference mirroring the PyTorch module (scatter-add aggregation)."""
    w1_all, w2_all, w3_all, w4_all = params
    hop, _, h_dim = w1_all.shape
    n = x.shape[0]
    e = edge_index.shape[1]
    row, col = edge_index[0], edge_index[1]
    hp = jax.lax.Precision.HIGHEST

    edge_attr = jnp.ones((e, 1), jnp.float32)
    h = jnp.zeros((n, h_dim), jnp.float32)
    for l in range(hop):
        nfe = jnp.dot(x, w1_all[l], precision=hp)
        n_aggr = jnp.zeros((n, h_dim), jnp.float32).at[row].add(h[col])
        efe = jnp.maximum(jnp.dot(edge_attr, w4_all[l], precision=hp), 0.0)
        e_aggr = jnp.zeros((n, h_dim), jnp.float32).at[row].add(efe)
        h = jnp.maximum(nfe + jnp.dot(n_aggr, w2_all[l], precision=hp)
                        + jnp.dot(e_aggr, w3_all[l], precision=hp), 0.0)
        # Dropout: identity in eval mode.
    return h


if __name__ == "__main__":
    key = jax.random.PRNGKey(0)
    k_x, k_e, k_p = jax.random.split(key, 3)

    num_nodes = 64           # N
    node_feature_dim = 16    # F
    hidden_dim = 128         # H (lane-dense output)
    hop = 3                  # module default
    num_edges = 256          # E (lane-dense edge axis)

    x = jax.random.normal(k_x, (num_nodes, node_feature_dim), dtype=jnp.float32)
    edge_index = jax.random.randint(k_e, (2, num_edges), 0, num_nodes, dtype=jnp.int32)
    params = init_params(k_p, node_feature_dim, hidden_dim, hop)

    out = s2v_encoder_forward(x, edge_index, params)
    out = jax.block_until_ready(out)

    ref = s2v_encoder_reference(x, edge_index, params)
    assert out.shape == (num_nodes, hidden_dim), out.shape
    max_err = float(jnp.max(jnp.abs(out - ref)))
    assert jnp.allclose(out, ref, atol=2e-3, rtol=2e-3), max_err

    print("KERNEL_OK")
</pallas_src>

<mosaic_0001>
module attributes {stable_mosaic.version = 11 : i64} {
  func.func @s2v_encoder_kernel(%arg0: memref<64x16xf32, #tpu.memory_space<vmem>>, %arg1: memref<1x256xi32, #tpu.memory_space<vmem>>, %arg2: memref<1x256xi32, #tpu.memory_space<vmem>>, %arg3: memref<16x384xf32, #tpu.memory_space<vmem>>, %arg4: memref<3x128x128xf32, #tpu.memory_space<vmem>>, %arg5: memref<3x1x128xf32, #tpu.memory_space<vmem>>, %arg6: memref<64x128xf32, #tpu.memory_space<vmem>>) attributes {dimension_semantics = [], scalar_prefetch = 0 : i64, scratch_operands = 0 : i64, tpu.core_type = #tpu.core_type<tc>} {
    %0 = tpu.iota {dimensions = array<i32: 0>} : vector<64x256xi32>
    %c0 = arith.constant 0 : index
    %c0_0 = arith.constant 0 : index
    %1 = vector.load %arg1[%c0, %c0_0] : memref<1x256xi32, #tpu.memory_space<vmem>>, vector<1x256xi32>
    %2 = vector.broadcast %1 : vector<1x256xi32> to vector<64x256xi32>
    %3 = arith.cmpi eq, %0, %2 : vector<64x256xi32>
    %4 = arith.extui %3 : vector<64x256xi1> to vector<64x256xi32>
    %5 = arith.sitofp %4 : vector<64x256xi32> to vector<64x256xf32>
    %6 = arith.truncf %5 : vector<64x256xf32> to vector<64x256xbf16>
    %c0_1 = arith.constant 0 : index
    %c0_2 = arith.constant 0 : index
    %7 = vector.load %arg2[%c0_1, %c0_2] : memref<1x256xi32, #tpu.memory_space<vmem>>, vector<1x256xi32>
    %8 = vector.broadcast %7 : vector<1x256xi32> to vector<64x256xi32>
    %9 = arith.cmpi eq, %0, %8 : vector<64x256xi32>
    %10 = arith.extui %9 : vector<64x256xi1> to vector<64x256xi32>
    %11 = arith.sitofp %10 : vector<64x256xi32> to vector<64x256xf32>
    %12 = arith.truncf %11 : vector<64x256xf32> to vector<64x256xbf16>
    %cst = arith.constant dense<0.000000e+00> : vector<64x64xf32>
    %13 = tpu.matmul %6, %12, %cst {dimension_numbers = #tpu.dot_dimension_numbers<[1], [1], [0], [0], [0, 0, 1, 0], [], []>} : vector<64x256xbf16>, vector<64x256xbf16>, vector<64x64xf32> -> vector<64x64xf32>
    %cst_3 = arith.constant dense<0.000000e+00> : vector<64xf32>
    %14 = vector.multi_reduction <add>, %13, %cst_3 [1] : vector<64x64xf32> to vector<64xf32>
    %15 = vector.shape_cast %14 : vector<64xf32> to vector<64x1xf32>
    %c0_4 = arith.constant 0 : index
    %c0_5 = arith.constant 0 : index
    %16 = vector.load %arg0[%c0_4, %c0_5] : memref<64x16xf32, #tpu.memory_space<vmem>>, vector<64x16xf32>
    %c0_6 = arith.constant 0 : index
    %c0_7 = arith.constant 0 : index
    %17 = vector.load %arg3[%c0_6, %c0_7] : memref<16x384xf32, #tpu.memory_space<vmem>>, vector<16x384xf32>
    %cst_8 = arith.constant dense<0.000000e+00> : vector<64x384xf32>
    %18 = tpu.matmul %16, %17, %cst_8 {dimension_numbers = #tpu.dot_dimension_numbers<[1], [0], [0], [1], [0, 0, 1, 1], [], []>} : vector<64x16xf32>, vector<16x384xf32>, vector<64x384xf32> -> vector<64x384xf32>
    %19 = vector.extract_strided_slice %18 {offsets = [0, 0], sizes = [64, 128], strides = [1, 1]} : vector<64x384xf32> to vector<64x128xf32>
    %c0_9 = arith.constant 0 : index
    %c0_10 = arith.constant 0 : index
    %c0_11 = arith.constant 0 : index
    %20 = vector.load %arg5[%c0_9, %c0_10, %c0_11] : memref<3x1x128xf32, #tpu.memory_space<vmem>>, vector<1x1x128xf32>
    %21 = vector.shape_cast %20 : vector<1x1x128xf32> to vector<1x128xf32>
    %22 = vector.broadcast %15 : vector<64x1xf32> to vector<64x128xf32>
    %23 = vector.broadcast %21 : vector<1x128xf32> to vector<64x128xf32>
    %24 = arith.mulf %22, %23 : vector<64x128xf32>
    %25 = arith.addf %19, %24 : vector<64x128xf32>
    %cst_12 = arith.constant 0.000000e+00 : f32
    %26 = vector.broadcast %cst_12 : f32 to vector<64x128xf32>
    %27 = arith.maximumf %25, %26 : vector<64x128xf32>
    %28 = vector.extract_strided_slice %18 {offsets = [0, 128], sizes = [64, 128], strides = [1, 1]} : vector<64x384xf32> to vector<64x128xf32>
    %c1 = arith.constant 1 : index
    %c0_13 = arith.constant 0 : index
    %c0_14 = arith.constant 0 : index
    %29 = vector.load %arg5[%c1, %c0_13, %c0_14] : memref<3x1x128xf32, #tpu.memory_space<vmem>>, vector<1x1x128xf32>
    %30 = vector.shape_cast %29 : vector<1x1x128xf32> to vector<1x128xf32>
    %31 = vector.broadcast %15 : vector<64x1xf32> to vector<64x128xf32>
    %32 = vector.broadcast %30 : vector<1x128xf32> to vector<64x128xf32>
    %33 = arith.mulf %31, %32 : vector<64x128xf32>
    %34 = arith.addf %28, %33 : vector<64x128xf32>
    %cst_15 = arith.constant dense<0.000000e+00> : vector<64x128xf32>
    %35 = tpu.matmul %13, %27, %cst_15 {dimension_numbers = #tpu.dot_dimension_numbers<[1], [0], [0], [1], [0, 0, 1, 1], [], []>} : vector<64x64xf32>, vector<64x128xf32>, vector<64x128xf32> -> vector<64x128xf32>
    %c1_16 = arith.constant 1 : index
    %c0_17 = arith.constant 0 : index
    %c0_18 = arith.constant 0 : index
    %36 = vector.load %arg4[%c1_16, %c0_17, %c0_18] : memref<3x128x128xf32, #tpu.memory_space<vmem>>, vector<1x128x128xf32>
    %37 = vector.shape_cast %36 : vector<1x128x128xf32> to vector<128x128xf32>
    %cst_19 = arith.constant dense<0.000000e+00> : vector<64x128xf32>
    %38 = tpu.matmul %35, %37, %cst_19 {dimension_numbers = #tpu.dot_dimension_numbers<[1], [0], [0], [1], [0, 0, 1, 1], [], []>} : vector<64x128xf32>, vector<128x128xf32>, vector<64x128xf32> -> vector<64x128xf32>
    %39 = arith.addf %34, %38 : vector<64x128xf32>
    %cst_20 = arith.constant 0.000000e+00 : f32
    %40 = vector.broadcast %cst_20 : f32 to vector<64x128xf32>
    %41 = arith.maximumf %39, %40 : vector<64x128xf32>
    %42 = vector.extract_strided_slice %18 {offsets = [0, 256], sizes = [64, 128], strides = [1, 1]} : vector<64x384xf32> to vector<64x128xf32>
    %c2 = arith.constant 2 : index
    %c0_21 = arith.constant 0 : index
    %c0_22 = arith.constant 0 : index
    %43 = vector.load %arg5[%c2, %c0_21, %c0_22] : memref<3x1x128xf32, #tpu.memory_space<vmem>>, vector<1x1x128xf32>
    %44 = vector.shape_cast %43 : vector<1x1x128xf32> to vector<1x128xf32>
    %45 = vector.broadcast %15 : vector<64x1xf32> to vector<64x128xf32>
    %46 = vector.broadcast %44 : vector<1x128xf32> to vector<64x128xf32>
    %47 = arith.mulf %45, %46 : vector<64x128xf32>
    %48 = arith.addf %42, %47 : vector<64x128xf32>
    %cst_23 = arith.constant dense<0.000000e+00> : vector<64x128xf32>
    %49 = tpu.matmul %13, %41, %cst_23 {dimension_numbers = #tpu.dot_dimension_numbers<[1], [0], [0], [1], [0, 0, 1, 1], [], []>} : vector<64x64xf32>, vector<64x128xf32>, vector<64x128xf32> -> vector<64x128xf32>
    %c2_24 = arith.constant 2 : index
    %c0_25 = arith.constant 0 : index
    %c0_26 = arith.constant 0 : index
    %50 = vector.load %arg4[%c2_24, %c0_25, %c0_26] : memref<3x128x128xf32, #tpu.memory_space<vmem>>, vector<1x128x128xf32>
    %51 = vector.shape_cast %50 : vector<1x128x128xf32> to vector<128x128xf32>
    %cst_27 = arith.constant dense<0.000000e+00> : vector<64x128xf32>
    %52 = tpu.matmul %49, %51, %cst_27 {dimension_numbers = #tpu.dot_dimension_numbers<[1], [0], [0], [1], [0, 0, 1, 1], [], []>} : vector<64x128xf32>, vector<128x128xf32>, vector<64x128xf32> -> vector<64x128xf32>
    %53 = arith.addf %48, %52 : vector<64x128xf32>
    %cst_28 = arith.constant 0.000000e+00 : f32
    %54 = vector.broadcast %cst_28 : f32 to vector<64x128xf32>
    %55 = arith.maximumf %53, %54 : vector<64x128xf32>
    %c0_29 = arith.constant 0 : index
    %c0_30 = arith.constant 0 : index
    %56 = vector.load %arg6[%c0_29, %c0_30] : memref<64x128xf32, #tpu.memory_space<vmem>>, vector<64x128xf32>
    tpu.vector_store %arg6[%c0_29, %c0_30], %55 {strides = array<i32>} : memref<64x128xf32, #tpu.memory_space<vmem>>, vector<64x128xf32>,
    return
  }
}

</mosaic_0001>

<bundles_post_ra>
// kernel: tpu_custom_call.1
= control target key start
LH: loop header
LB: loop body
LE: loop exit
PB: predicated region body
PF: predicated region fallthrough
CT: control target
= control target key end

     0   :  { %11 = vsyncpa [#allocation3], 0  ;;  %s2097_s0 = inlined_call_operand.vmem [shape: f32[64,16], index: 0, kind: input, shape index: {}]   ;;  %s2098_s1 = inlined_call_operand.vmem [shape: s32[1,256], index: 1, kind: input, shape index: {}]   ;;  %s2099_s2 = inlined_call_operand.vmem [shape: s32[1,256], index: 2, kind: input, shape index: {}]   ;;  %s2100_s3 = inlined_call_operand.vmem [shape: f32[16,384], index: 3, kind: input, shape index: {}]   ;;  %s2101_s4 = inlined_call_operand.hbm [shape: f32[3,128,128], index: 4, kind: input, shape index: {}]   ;;  %s2102_s5 = inlined_call_operand.vmem [shape: f32[3,1,128], index: 5, kind: input, shape index: {}]   ;;  %s2103_s6 = inlined_call_operand.hbm [shape: f32[64,128], index: 6, kind: output, shape index: {}]  }
   0x1   :  { %12 = vsyncpa [#allocation4], 0  ;;  %s1664_s21 = smov [#allocation2]   ;;  %s1616_s25 = scalar_lea.hbm %s2101_s4, 6144 }
   0x2   :  { %s26_s22 = sshll.u32 %s1664_s21, 4  ;;  %p1617_p0 = scmp.ne.s32.totalorder %s2101_s4, %s1616_s25  ;;  %s27_s22 = int_to_ptr.vmem [resolvable:$true] %s26_s22 }
   0x3   :  { %p1620_p1 = scmp.lt.u32.totalorder %s1616_s25, %s2101_s4 }
   0x5   :  { %p1622_p2 = pnand %p1620_p1, %p1617_p0 }
   0x7   :  { %1625 = shalt.err (!%p1622_p2)
}
   0x8   :  { %s1626_s30 = scalar_lea.vmem %s27_s22, 6144  ;;  %p1631_p4 = scmp.lt.s32.totalorder %s27_s22, %s27_s22 }
   0x9   :  { %p1627_p3 = scmp.ne.s32.totalorder %s27_s22, %s1626_s30  ;;  %p1632_p5 = scmp.lt.s32.totalorder %s1626_s30, %s1626_s30 }
   0xb   :  { %p1633_p6 = por %p1632_p5, %p1631_p4 }
   0xd   :  { %p1634_p7 = pnand %p1633_p6, %p1627_p3 }
   0xf   :  { %1637 = shalt.err (!%p1634_p7)
}
  0x10   :  { %s1665_s7 = smov 128   ;;  %s1666_s8 = smov 8  }
  0x11   :  { %32 = dma.hbm_to_vmem [thread:$0]  %s2101_s4, 6144, %s27_s22, [#allocation3], %s1665_s7, %s1665_s7, %s1666_s8  }
  0x12   :  { %1660 = dma.done.wait [#allocation3], 6144  }
  0x13   :  { %1661 = vsyncadd [#allocation3], 4294961152  ;;  %v39_v0 = vlaneseq  ;;  %v1667_v1 = vmov 0.0   ;;  %v113_v6 = vld [vmem:[%s2099_s2] sm:$0x3]  ;;  %v277_v9 = vld [vmem:[%s2100_s3 + $0x8] sm:$0xff] }
  0x14   :  { %371 = vmatprep.mubr.f32.mxu1 %v1667_v1  ;;  %v280_v12 = vld [vmem:[%s2100_s3 + $0x20] sm:$0xff]  ;;  %v279_v14 = vld [vmem:[%s2100_s3 + $0x18] sm:$0xff]  ;;  %v1668_v20 = vmov 1.0|1.0   ;;  %vm282_vm13 = vcmask 130048   ;;  %v278_v23 = vld [vmem:[%s2100_s3 + $0x10] sm:$0xff] }
  0x15   :  { %v1721_v2 = vshrl.u32 %v39_v0, 7  ;;  %v276_v13 = vld [vmem:[%s2100_s3] sm:$0xff]  ;;  %v1490_v17 = vpack.c.bf16 %v280_v12, %v277_v9  ;;  %v281_v24 = vld [vmem:[%s2100_s3 + $0x28] sm:$0xff]  ;;  %v270_v29 = vld [vmem:[%s2097_s0 + $0x10] sm:$0xff] }
  0x16   :  { %v1759_v16 = vld [vmem:[%s2098_s1] sm:$0x3]  ;;  %v1492_v19 = vpack.c.bf16 %v279_v14, %v276_v13  ;;  %v1494_v25 = vpack.c.bf16 %v281_v24, %v278_v23  ;;  %v269_v26 = vld [vmem:[%s2097_s0 + $0x8] sm:$0xff]  ;;  %v271_v30 = vld [vmem:[%s2097_s0 + $0x18] sm:$0xff] }
  0x17   :  { %v55_v3 = vsub.s32 1, %v1721_v2  ;;  %v51_v4 = vsub.s32 0, %v1721_v2  ;;  %v1726_v5 = vadd.s32 8, %v1721_v2  ;;  %v1732_v7 = vadd.s32 16, %v1721_v2  ;;  %1491 = vmatprep.subr.bf16.mxu1 %v1490_v17  ;;  %v1787_v22 = vld [vmem:[%s2097_s0] sm:$0xff]  ;;  %v273_v33 = vld [vmem:[%s2097_s0 + $0x28] sm:$0xff] }
  0x18   :  { %v1735_v8 = vadd.s32 24, %v1721_v2  ;;  %v1754_v15 = vadd.s32 32, %v1721_v2  ;;  %v1770_v18 = vadd.s32 40, %v1721_v2  ;;  %1493 = vmatpush1.bf16.msra.mxu1 %v1492_v19  ;;  %v1806_v27 = vadd.s32 48, %v1721_v2  ;;  %v272_v31 = vld [vmem:[%s2097_s0 + $0x20] sm:$0xff]  ;;  %v274_v34 = vld [vmem:[%s2097_s0 + $0x30] sm:$0xff] }
  0x19   :  { %v121_v10 = vrot.slane %v113_v6, %v55_v3  ;;  %v1742_v11 = vrot.slane %v113_v6, %v51_v4  ;;  %v1774_v21 = vrot.slane %v1759_v16, %v55_v3  ;;  %v1809_v28 = vadd.s32 56, %v1721_v2  ;;  %1495 = vmatprep.subr.bf16.mxu1 %v1494_v25  ;;  %v275_v35 = vld [vmem:[%s2097_s0 + $0x38] sm:$0xff]  ;;  %v710_v12 = vld [vmem:[#allocation2 + $0x80] sm:$0xff]  ;;  %v712_v14 = vld [vmem:[#allocation2 + $0x90] sm:$0xff] }
  0x1a   :  { %v52_v32 = vrot.slane %v1759_v16, %v51_v4  ;;  %v711_v13 = vld [vmem:[#allocation2 + $0x88] sm:$0xff]  ;;  %v713_v16 = vld [vmem:[#allocation2 + $0x98] sm:$0xff]  ;;  %v718_v24 = vld [vmem:[#allocation2 + $0xc0] sm:$0xff] }
  0x1b   :  { %vm123_vm0 = vcmp.eq.s32.totalorder %v1721_v2, %v121_v10  ;;  %vm125_vm1 = vcmp.eq.s32.totalorder %v1726_v5, %v121_v10  ;;  %vm122_vm2 = vcmp.eq.s32.totalorder %v1721_v2, %v1742_v11  ;;  %vm124_vm3 = vcmp.eq.s32.totalorder %v1726_v5, %v1742_v11  ;;  %1203 = vmatmul.mubr.msk.f32.vlgmr.msra.gmra.mrb[0].mxu1 %vm282_vm13, %v1787_v22  ;;  %v715_v19 = vld [vmem:[#allocation2 + $0xa8] sm:$0xff] }
  0x1c   :  { %vm1171_vm4 = vmpackc.low %vm125_vm1, %vm123_vm0  ;;  %vm127_vm5 = vcmp.eq.s32.totalorder %v1732_v7, %v121_v10  ;;  %vm129_vm6 = vcmp.eq.s32.totalorder %v1735_v8, %v121_v10  ;;  %vm126_vm9 = vcmp.eq.s32.totalorder %v1732_v7, %v1742_v11  ;;  %vm128_vm10 = vcmp.eq.s32.totalorder %v1735_v8, %v1742_v11  ;;  %377 = vmatprep.mubr.f32.mxu1 %v1667_v1 }
  0x1d   :  { %1172 = vmatprep.subr.msk.bf16.mxu0 %vm1171_vm4, %v1668_v20  ;;  %vm1173_vm7 = vmpackc.low %vm124_vm3, %vm122_vm2  ;;  %vm131_vm11 = vcmp.eq.s32.totalorder %v1754_v15, %v121_v10  ;;  %vm133_vm12 = vcmp.eq.s32.totalorder %v1770_v18, %v121_v10  ;;  %vm58_vm14 = vcmp.eq.s32.totalorder %v1721_v2, %v1774_v21  ;;  %vm60_vm15 = vcmp.eq.s32.totalorder %v1726_v5, %v1774_v21 }
  0x1e   :  { %1174 = vmatpush1.bf16.xpose.msk.msra.mxu0 %vm1173_vm7, %v1668_v20  ;;  %vm1175_vm8 = vmpackc.low %vm129_vm6, %vm127_vm5  ;;  %1497 = vmatpush3.bf16.msra.mxu1 %v1494_v25  ;;  %vm130_vm3 = vcmp.eq.s32.totalorder %v1754_v15, %v1742_v11  ;;  %vm132_vm4 = vcmp.eq.s32.totalorder %v1770_v18, %v1742_v11  ;;  %vm135_vm5 = vcmp.eq.s32.totalorder %v1806_v27, %v121_v10  ;;  %v719_v25 = vld [vmem:[#allocation2 + $0xc8] sm:$0xff] }
  0x1f   :  { %1176 = vmatprep.subr.msk.bf16.mxu0 %vm1175_vm8, %v1668_v20  ;;  %vm1177_vm0 = vmpackc.low %vm128_vm10, %vm126_vm9  ;;  %1204 = vmatmul.mubr.msk.f32.gmra.mrb[2].mxu1 %vm282_vm13, %v269_v26  ;;  %vm137_vm6 = vcmp.eq.s32.totalorder %v1809_v28, %v121_v10  ;;  %vm134_vm9 = vcmp.eq.s32.totalorder %v1806_v27, %v1742_v11  ;;  %vm136_vm10 = vcmp.eq.s32.totalorder %v1809_v28, %v1742_v11 }
  0x20   :  { %vm1179_vm1 = vmpackc.low %vm133_vm12, %vm131_vm11  ;;  %383 = vmatprep.mubr.f32.mxu1 %v1667_v1  ;;  %vm57_vm12 = vcmp.eq.s32.totalorder %v1721_v2, %v52_v32  ;;  %v1518_v17 = vpack.c.bf16 %v713_v16, %v712_v14 }
  0x21   :  { %vm1187_vm2 = vmpackc.low %vm60_vm15, %vm58_vm14  ;;  %vm59_vm14 = vcmp.eq.s32.totalorder %v1726_v5, %v52_v32  ;;  %vm62_vm15 = vcmp.eq.s32.totalorder %v1732_v7, %v1774_v21 }
  0x22   :  { %1188 = vmatprep.mubr.msk.bf16.mxu0 %vm1187_vm2, %v1668_v20  ;;  %vm1181_vm7 = vmpackc.low %vm132_vm4, %vm130_vm3  ;;  %vm61_vm3 = vcmp.eq.s32.totalorder %v1732_v7, %v52_v32  ;;  %vm63_vm4 = vcmp.eq.s32.totalorder %v1735_v8, %v52_v32 }
  0x23   :  { %1205 = vmatmul.mubr.msk.f32.gmra.mrb[4].mxu1 %vm282_vm13, %v270_v29  ;;  %vm1183_vm8 = vmpackc.low %vm137_vm6, %vm135_vm5  ;;  %vm66_vm5 = vcmp.eq.s32.totalorder %v1754_v15, %v1774_v21  ;;  %vm68_vm6 = vcmp.eq.s32.totalorder %v1770_v18, %v1774_v21 }
  0x24   :  { %389 = vmatprep.mubr.f32.mxu1 %v1667_v1  ;;  %vm1185_vm11 = vmpackc.low %vm136_vm10, %vm134_vm9  ;;  %vm65_vm9 = vcmp.eq.s32.totalorder %v1754_v15, %v52_v32  ;;  %vm67_vm10 = vcmp.eq.s32.totalorder %v1770_v18, %v52_v32  ;;  %v1514_v15 = vpack.c.bf16 %v711_v13, %v710_v12  ;;  %v714_v18 = vld [vmem:[#allocation2 + $0xa0] sm:$0xff] }
  0x26   :  { %1178 = vmatpush1.bf16.xpose.msk.msra.mxu0 %vm1177_vm0, %v1668_v20  ;;  %vm64_vm0 = vcmp.eq.s32.totalorder %v1735_v8, %v1774_v21 }
  0x27   :  { %1180 = vmatprep.subr.msk.bf16.mxu0 %vm1179_vm1, %v1668_v20  ;;  %1206 = vmatmul.mubr.msk.f32.gmra.mrb[6].mxu1 %vm282_vm13, %v271_v30  ;;  %vm1189_vm1 = vmpackc.low %vm59_vm14, %vm57_vm12  ;;  %vm72_vm12 = vcmp.eq.s32.totalorder %v1809_v28, %v1774_v21 }
  0x28   :  { %395 = vmatprep.mubr.f32.mxu1 %v1667_v1  ;;  %vm1191_vm2 = vmpackc.low %vm64_vm0, %vm62_vm15  ;;  %vm69_vm0 = vcmp.eq.s32.totalorder %v1806_v27, %v52_v32 }
  0x29   :  { %vm1197_vm14 = vmpackc.low %vm67_vm10, %vm65_vm9 }
  0x2b   :  { %1207 = vmatmul.mubr.msk.f32.gmra.mrb[8].mxu1 %vm282_vm13, %v272_v31 }
  0x2c   :  { %401 = vmatprep.mubr.f32.mxu1 %v1667_v1 }
  0x2e   :  { %1182 = vmatpush1.bf16.xpose.msk.msra.mxu0 %vm1181_vm7, %v1668_v20  ;;  %vm1193_vm7 = vmpackc.low %vm63_vm4, %vm61_vm3  ;;  %vm243_vm3 = vcmask 523264  }
  0x2f   :  { %1184 = vmatprep.subr.msk.bf16.mxu0 %vm1183_vm8, %v1668_v20  ;;  %1208 = vmatmul.mubr.msk.f32.gmra.mrb[10].mxu1 %vm282_vm13, %v273_v33  ;;  %vm1195_vm8 = vmpackc.low %vm68_vm6, %vm66_vm5 }
  0x30   :  { %407 = vmatprep.mubr.f32.mxu1 %v1667_v1 }
  0x33   :  { %1209 = vmatmul.mubr.msk.f32.gmra.mrb[12].mxu1 %vm282_vm13, %v274_v34 }
  0x34   :  { %413 = vmatprep.mubr.f32.mxu1 %v1667_v1 }
  0x36   :  { %1186 = vmatpush1.bf16.xpose.msk.msra.mxu0 %vm1185_vm11, %v1668_v20  ;;  %vm70_vm11 = vcmp.eq.s32.totalorder %v1806_v27, %v1774_v21  ;;  %v716_v21 = vld [vmem:[#allocation2 + $0xb0] sm:$0xff] }
  0x37   :  { %1210 = vmatmul.mubr.msk.f32.gmra.mrb[14].mxu1 %vm282_vm13, %v275_v35  ;;  %vm1199_vm15 = vmpackc.low %vm72_vm12, %vm70_vm11  ;;  %1515 = vmatprep.subr.bf16.mxu0 %v1514_v15  ;;  %v720_v27 = vld [vmem:[#allocation2 + $0xd0] sm:$0xff] }
  0x38   :  { %1334 = vmatprep.mubr.msk.f32.mxu1 %vm282_vm13, %v1787_v22  ;;  %v717_v22 = vld [vmem:[#allocation2 + $0xb8] sm:$0xff] }
  0x39   :  { %v1526_v23 = vpack.c.bf16 %v717_v22, %v716_v21 }
  0x3b   :  { %1335 = vmatmul.mubr.msk.f32.vlgmr.msra.gmra.mrb[16].mxu1 %vm282_vm13, %v269_v26  ;;  %v1530_v26 = vpack.c.bf16 %v719_v25, %v718_v24 }
  0x3c   :  { %1337 = vmatprep.mubr.msk.f32.mxu1 %vm282_vm13, %v270_v29 }
  0x3d   :  { %1190 = vmatmul.mubr.msk.bf16.vlgmr.msra.gmra.mrb[0].mxu0 %vm1189_vm1, %v1668_v20  ;;  %vm71_vm1 = vcmp.eq.s32.totalorder %v1809_v28, %v52_v32  ;;  %v721_v28 = vld [vmem:[#allocation2 + $0xd8] sm:$0xff] }
  0x3e   :  { %1192 = vmatprep.mubr.msk.bf16.mxu0 %vm1191_vm2, %v1668_v20  ;;  %vm1201_vm2 = vmpackc.low %vm71_vm1, %vm69_vm0  ;;  %1517 = vmatpush3.bf16.msra.mxu0 %v1514_v15  ;;  %v1534_v29 = vpack.c.bf16 %v721_v28, %v720_v27 }
  0x3f   :  { %1338 = vmatmul.mubr.msk.f32.gmra.mrb[18].mxu1 %vm282_vm13, %v271_v30  ;;  %1519 = vmatprep.subr.bf16.mxu0 %v1518_v17  ;;  %v722_v30 = vld [vmem:[#allocation2 + $0xe0] sm:$0xff] }
  0x40   :  { %1340 = vmatprep.mubr.msk.f32.mxu1 %vm282_vm13, %v272_v31  ;;  %v723_v31 = vld [vmem:[#allocation2 + $0xe8] sm:$0xff] }
  0x41   :  { %v1538_v32 = vpack.c.bf16 %v723_v31, %v722_v30 }
  0x42   :  { %1521 = vmatpush3.bf16.msra.mxu0 %v1518_v17 }
  0x43   :  { %1341 = vmatmul.mubr.msk.f32.gmra.mrb[20].mxu1 %vm282_vm13, %v273_v33  ;;  %v724_v33 = vld [vmem:[#allocation2 + $0xf0] sm:$0xff] }
  0x44   :  { %1343 = vmatprep.mubr.msk.f32.mxu1 %vm282_vm13, %v274_v34  ;;  %v725_v34 = vld [vmem:[#allocation2 + $0xf8] sm:$0xff] }
  0x45   :  { %1194 = vmatmul.mubr.msk.bf16.gmra.mrb[4].mxu0 %vm1193_vm7, %v1668_v20 }
  0x46   :  { %1196 = vmatprep.mubr.msk.bf16.mxu0 %vm1195_vm8, %v1668_v20 }
  0x47   :  { %1344 = vmatmul.mubr.msk.f32.gmra.mrb[22].mxu1 %vm282_vm13, %v275_v35  ;;  %v1542_v35 = vpack.c.bf16 %v725_v34, %v724_v33 }
  0x4d   :  { %1198 = vmatmul.mubr.msk.bf16.gmra.mrb[8].mxu0 %vm1197_vm14, %v1668_v20 }
  0x4e   :  { %1200 = vmatprep.mubr.msk.bf16.mxu0 %vm1199_vm15, %v1668_v20 }
  0x55   :  { %1202 = vmatmul.mubr.msk.bf16.gmra.mrb[12].mxu0 %vm1201_vm2, %v1668_v20  ;;  %v1522_v20 = vpack.c.bf16 %v715_v19, %v714_v18 }
  0x57   :  { %1523 = vmatprep.subr.bf16.mxu0 %v1522_v20 }
  0x58   :  { %1525 = vmatpush3.bf16.msra.mxu0 %v1522_v20 }
  0x59   :  { %1527 = vmatprep.subr.bf16.mxu0 %v1526_v23 }
  0x5c   :  { %1529 = vmatpush3.bf16.msra.mxu0 %v1526_v23 }
  0x5d   :  { %1531 = vmatprep.subr.bf16.mxu0 %v1530_v26 }
  0x60   :  { %1533 = vmatpush3.bf16.msra.mxu0 %v1530_v26 }
  0x61   :  { %1535 = vmatprep.subr.bf16.mxu0 %v1534_v29 }
  0x64   :  { %1537 = vmatpush3.bf16.msra.mxu0 %v1534_v29 }
  0x65   :  { %1539 = vmatprep.subr.bf16.mxu0 %v1538_v32 }
  0x68   :  { %1541 = vmatpush3.bf16.msra.mxu0 %v1538_v32 }
  0x69   :  { %1543 = vmatprep.subr.bf16.mxu0 %v1542_v35 }
  0x6c   :  { %1545 = vmatpush3.bf16.msra.mxu0 %v1542_v35 }
  0xee   :  { %v1897_v36 = vpop.f32.mrb[0].mxu1 }
  0xef   :  { %v1899_v37 = vpop.f32.mrb[1].mxu1 }
  0xf2   :  { %v1925_v54 = vpop.f32.mrb[2].mxu1 }
  0xf3   :  { %v1929_v57 = vpop.f32.mrb[3].mxu1 }
  0xf6   :  { %v1931_v58 = vpop.f32.mrb[4].mxu1 }
  0xf7   :  { %v1933_v59 = vpop.f32.mrb[5].mxu1 }
  0xfa   :  { %v1941_v0 = vpop.f32.mrb[6].mxu1 }
  0xfb   :  { %v1945_v3 = vpop.f32.mrb[7].mxu1 }
  0xfe   :  { %v1947_v4 = vpop.f32.mrb[8].mxu1 }
  0xff   :  { %v1949_v5 = vpop.f32.mrb[9].mxu1 }
 0x102   :  { %v1951_v6 = vpop.f32.mrb[10].mxu1 }
 0x103   :  { %v1953_v7 = vpop.f32.mrb[11].mxu1 }
 0x106   :  { %v1955_v8 = vpop.f32.mrb[12].mxu1 }
 0x107   :  { %v1957_v9 = vpop.f32.mrb[13].mxu1 }
 0x10a   :  { %v1959_v10 = vpop.f32.mrb[14].mxu1 }
 0x10b   :  { %v1961_v11 = vpop.f32.mrb[15].mxu1 }
 0x110   :  { %v1901_v38 = vpop.f32.mrb[0].mxu0 }
 0x111   :  { %v214_v39 = vpop.f32.mrb[1].mxu0  ;;  %1362 = vmatprep.mubr.msk.f32.mxu1 %vm243_vm3, %v1901_v38  ;;  %v244_v40 = vsel %vm243_vm3, %v1901_v38, 0.0 }
 0x112   :  { %245 = vadd.xlane.f32.xlu0 %v244_v40  ;;  %v1907_v41 = vpop.f32.mrb[2].mxu0  ;;  %v1219_v39 = vld [vmem:[%s2102_s5] ss:$0 sm:$0xff]  ;;  %v1221_v40 = vld [vmem:[%s2102_s5 + $0x1] ss:$0 sm:$0xff] }
 0x113   :  { %v217_v42 = vpop.f32.mrb[3].mxu0  ;;  %v247_v43 = vsel %vm243_vm3, %v1907_v41, 0.0 }
 0x116   :  { %248 = vadd.xlane.f32.xlu0 %v247_v43 }
 0x118   :  { %v1911_v44 = vpop.f32.mrb[4].mxu0 }
 0x119   :  { %v222_v45 = vpop.f32.mrb[5].mxu0  ;;  %v250_v46 = vsel %vm243_vm3, %v1911_v44, 0.0 }
 0x11a   :  { %251 = vadd.xlane.f32.xlu1 %v250_v46  ;;  %v1915_v47 = vpop.f32.mrb[6].mxu0 }
 0x11b   :  { %v225_v48 = vpop.f32.mrb[7].mxu0  ;;  %v253_v49 = vsel %vm243_vm3, %v1915_v47, 0.0 }
 0x11e   :  { %254 = vadd.xlane.f32.xlu1 %v253_v49 }
 0x120   :  { %v1919_v50 = vpop.f32.mrb[8].mxu0 }
 0x121   :  { %v230_v51 = vpop.f32.mrb[9].mxu0  ;;  %v256_v52 = vsel %vm243_vm3, %v1919_v50, 0.0 }
 0x122   :  { %257 = vadd.xlane.f32.xlu0 %v256_v52  ;;  %v1923_v53 = vpop.f32.mrb[10].mxu0 }
 0x123   :  { %v233_v55 = vpop.f32.mrb[11].mxu0  ;;  %v259_v56 = vsel %vm243_vm3, %v1923_v53, 0.0 }
 0x124   :  { %260 = vadd.xlane.f32.xlu1 %v259_v56 }
 0x128   :  { %v1935_v60 = vpop.f32.mrb[12].mxu0 }
 0x129   :  { %v238_v61 = vpop.f32.mrb[13].mxu0  ;;  %v262_v62 = vsel %vm243_vm3, %v1935_v60, 0.0 }
 0x12a   :  { %263 = vadd.xlane.f32.xlu0 %v262_v62  ;;  %v1939_v63 = vpop.f32.mrb[14].mxu0 }
 0x12b   :  { %v241_v1 = vpop.f32.mrb[15].mxu0  ;;  %v265_v2 = vsel %vm243_vm3, %v1939_v63, 0.0 }
 0x12c   :  { %266 = vadd.xlane.f32.xlu1 %v265_v2 }
 0x19f   :  { %v1969_v42 = vpop.xlane.xlu0 %245 }
 0x1a0   :  { %v532_v43 = vmul.f32 %v1219_v39, %v1969_v42  ;;  %v564_v45 = vmul.f32 %v1221_v40, %v1969_v42 }
 0x1a2   :  { %v1974_v46 = vadd.f32 %v564_v45, %v1899_v37  ;;  %v540_v49 = vadd.f32 %v532_v43, %v1897_v36 }
 0x1a3   :  { %v1976_v48 = vpop.xlane.xlu0 %248 }
 0x1a4   :  { %v533_v51 = vmul.f32 %v1219_v39, %v1976_v48  ;;  %v565_v52 = vmul.f32 %v1221_v40, %v1976_v48  ;;  %v548_v1 = vmax.f32 %v540_v49, 0.0 }
 0x1a6   :  { %v541_v55 = vadd.f32 %v533_v51, %v1925_v54  ;;  %v1983_v56 = vadd.f32 %v565_v52, %v1929_v57  ;;  %v977_v52 = vld [vmem:[#allocation2 + $0x100] sm:$0xff] }
 0x1a7   :  { %v1985_v61 = vpop.xlane.xlu1 %251 }
 0x1a8   :  { %v534_v62 = vmul.f32 %v1219_v39, %v1985_v61  ;;  %v566_v37 = vmul.f32 %v1221_v40, %v1985_v61  ;;  %v549_v2 = vmax.f32 %v541_v55, 0.0  ;;  %v978_v55 = vld [vmem:[#allocation2 + $0x108] sm:$0xff] }
 0x1aa   :  { %v1498_v12 = vpack.c.bf16 %v549_v2, %v548_v1  ;;  %v1990_v36 = vadd.f32 %v566_v37, %v1933_v59  ;;  %v542_v14 = vadd.f32 %v534_v62, %v1931_v58  ;;  %v979_v62 = vld [vmem:[#allocation2 + $0x110] sm:$0xff]  ;;  %v1562_v37 = vpack.c.bf16 %v978_v55, %v977_v52  ;;  %v980_v1 = vld [vmem:[#allocation2 + $0x118] sm:$0xff] }
 0x1ab   :  { %v1992_v13 = vpop.xlane.xlu1 %254  ;;  %v1566_v2 = vpack.c.bf16 %v980_v1, %v979_v62 }
 0x1ac   :  { %v535_v54 = vmul.f32 %v1219_v39, %v1992_v13  ;;  %v567_v57 = vmul.f32 %v1221_v40, %v1992_v13  ;;  %1499 = vmatprep.subr.bf16.mxu1 %v1498_v12  ;;  %v550_v19 = vmax.f32 %v542_v14, 0.0  ;;  %v982_v14 = vld [vmem:[#allocation2 + $0x128] sm:$0xff] }
 0x1ad   :  { %1501 = vmatpush3.bf16.msra.mxu1 %v1498_v12  ;;  %v981_v12 = vld [vmem:[#allocation2 + $0x120] sm:$0xff] }
 0x1ae   :  { %v543_v15 = vadd.f32 %v535_v54, %v1941_v0  ;;  %v1999_v16 = vadd.f32 %v567_v57, %v1945_v3  ;;  %v1570_v54 = vpack.c.bf16 %v982_v14, %v981_v12  ;;  %v983_v57 = vld [vmem:[#allocation2 + $0x130] sm:$0xff] }
 0x1af   :  { %v2001_v17 = vpop.xlane.xlu0 %257 }
 0x1b0   :  { %v536_v59 = vmul.f32 %v1219_v39, %v2001_v17  ;;  %v568_v18 = vmul.f32 %v1221_v40, %v2001_v17  ;;  %v551_v20 = vmax.f32 %v543_v15, 0.0  ;;  %v984_v15 = vld [vmem:[#allocation2 + $0x138] sm:$0xff] }
 0x1b1   :  { %v2005_v58 = vpop.xlane.xlu1 %260 }
 0x1b2   :  { %v537_v21 = vmul.f32 %v1219_v39, %v2005_v58  ;;  %v544_v22 = vadd.f32 %v536_v59, %v1947_v4  ;;  %v569_v23 = vmul.f32 %v1221_v40, %v2005_v58  ;;  %v1502_v0 = vpack.c.bf16 %v551_v20, %v550_v19  ;;  %v986_v19 = vld [vmem:[#allocation2 + $0x148] sm:$0xff]  ;;  %v987_v20 = vld [vmem:[#allocation2 + $0x150] sm:$0xff] }
 0x1b3   :  { %v2011_v3 = vadd.f32 %v568_v18, %v1949_v5  ;;  %v1574_v59 = vpack.c.bf16 %v984_v15, %v983_v57  ;;  %v985_v18 = vld [vmem:[#allocation2 + $0x140] sm:$0xff] }
 0x1b4   :  { %v545_v24 = vadd.f32 %v537_v21, %v1951_v6  ;;  %v2015_v25 = vadd.f32 %v569_v23, %v1953_v7  ;;  %1503 = vmatprep.subr.bf16.mxu1 %v1502_v0  ;;  %v552_v26 = vmax.f32 %v544_v22, 0.0  ;;  %v988_v21 = vld [vmem:[#allocation2 + $0x158] sm:$0xff]  ;;  %v989_v23 = vld [vmem:[#allocation2 + $0x160] sm:$0xff] }
 0x1b5   :  { %1505 = vmatpush3.bf16.msra.mxu1 %v1502_v0  ;;  %v1582_v22 = vpack.c.bf16 %v988_v21, %v987_v20  ;;  %v990_v0 = vld [vmem:[#allocation2 + $0x168] sm:$0xff] }
 0x1b6   :  { %v553_v27 = vmax.f32 %v545_v24, 0.0  ;;  %v1586_v24 = vpack.c.bf16 %v990_v0, %v989_v23 }
 0x1b7   :  { %v2017_v28 = vpop.xlane.xlu0 %263 }
 0x1b8   :  { %v1506_v29 = vpack.c.bf16 %v553_v27, %v552_v26  ;;  %v538_v4 = vmul.f32 %v1219_v39, %v2017_v28  ;;  %v570_v30 = vmul.f32 %v1221_v40, %v2017_v28  ;;  %v991_v26 = vld [vmem:[#allocation2 + $0x170] sm:$0xff]  ;;  %v992_v27 = vld [vmem:[#allocation2 + $0x178] sm:$0xff] }
 0x1b9   :  { %v2021_v31 = vpop.xlane.xlu1 %266 }
 0x1ba   :  { %v546_v5 = vadd.f32 %v538_v4, %v1955_v8  ;;  %v539_v6 = vmul.f32 %v1219_v39, %v2021_v31  ;;  %v571_v7 = vmul.f32 %v1221_v40, %v2021_v31  ;;  %1507 = vmatprep.subr.bf16.mxu1 %v1506_v29  ;;  %v2027_v32 = vadd.f32 %v570_v30, %v1957_v9 }
 0x1bb   :  { %1509 = vmatpush3.bf16.msra.mxu1 %v1506_v29  ;;  %v1590_v29 = vpack.c.bf16 %v992_v27, %v991_v26 }
 0x1bc   :  { %v547_v33 = vadd.f32 %v539_v6, %v1959_v10  ;;  %v2031_v34 = vadd.f32 %v571_v7, %v1961_v11  ;;  %v554_v35 = vmax.f32 %v546_v5, 0.0 }
 0x1be   :  { %v555_v43 = vmax.f32 %v547_v33, 0.0 }
 0x1c0   :  { %v1510_v45 = vpack.c.bf16 %v555_v43, %v554_v35 }
 0x1c2   :  { %1511 = vmatprep.subr.bf16.mxu1 %v1510_v45 }
 0x1c3   :  { %1513 = vmatpush3.bf16.msra.mxu1 %v1510_v45 }
 0x1c4   :  { %1563 = vmatprep.subr.bf16.mxu1 %v1562_v37 }
 0x1c6   :  { %1363 = vmatmul.mubr.msk.f32.vlgmr.msra.gmra.mrb[24].mxu1 %vm243_vm3, %v1907_v41 }
 0x1c7   :  { %1365 = vmatprep.mubr.msk.f32.mxu1 %vm243_vm3, %v1911_v44  ;;  %1565 = vmatpush3.bf16.msra.mxu1 %v1562_v37 }
 0x1c8   :  { %1567 = vmatprep.subr.bf16.mxu1 %v1566_v2 }
 0x1ca   :  { %1366 = vmatmul.mubr.msk.f32.gmra.mrb[26].mxu1 %vm243_vm3, %v1915_v47 }
 0x1cb   :  { %1368 = vmatprep.mubr.msk.f32.mxu1 %vm243_vm3, %v1919_v50  ;;  %1569 = vmatpush3.bf16.msra.mxu1 %v1566_v2 }
 0x1cc   :  { %1571 = vmatprep.subr.bf16.mxu1 %v1570_v54 }
 0x1ce   :  { %1369 = vmatmul.mubr.msk.f32.gmra.mrb[28].mxu1 %vm243_vm3, %v1923_v53 }
 0x1cf   :  { %1371 = vmatprep.mubr.msk.f32.mxu1 %vm243_vm3, %v1935_v60  ;;  %1573 = vmatpush3.bf16.msra.mxu1 %v1570_v54 }
 0x1d0   :  { %1575 = vmatprep.subr.bf16.mxu1 %v1574_v59 }
 0x1d2   :  { %1372 = vmatmul.mubr.msk.f32.gmra.mrb[30].mxu1 %vm243_vm3, %v1939_v63 }
 0x1d3   :  { %1577 = vmatpush3.bf16.msra.mxu1 %v1574_v59 }
 0x299   :  { %v1364_v8 = vpop.f32.mrb[24].mxu1 }
 0x29a   :  { %v670_v9 = vpop.f32.mrb[25].mxu1 }
 0x29b   :  { %1406 = vmatprep.mubr.f32.mxu0 %v670_v9 }
 0x29c   :  { %1407 = vmatmul.mubr.f32.vlgmr.msra.gmra.mrb[16].mxu0 %v1364_v8 }
 0x29d   :  { %v1367_v10 = vpop.f32.mrb[26].mxu1 }
 0x29e   :  { %v680_v11 = vpop.f32.mrb[27].mxu1 }
 0x29f   :  { %1409 = vmatprep.mubr.f32.mxu0 %v680_v11 }
 0x2a0   :  { %1410 = vmatmul.mubr.f32.gmra.mrb[18].mxu0 %v1367_v10 }
 0x2a1   :  { %v1370_v39 = vpop.f32.mrb[28].mxu1 }
 0x2a2   :  { %v690_v40 = vpop.f32.mrb[29].mxu1 }
 0x2a3   :  { %1412 = vmatprep.mubr.f32.mxu0 %v690_v40 }
 0x2a4   :  { %1413 = vmatmul.mubr.f32.gmra.mrb[20].mxu0 %v1370_v39 }
 0x2a5   :  { %v1373_v49 = vpop.f32.mrb[30].mxu1 }
 0x2a6   :  { %v700_v51 = vpop.f32.mrb[31].mxu1 }
 0x2a7   :  { %1415 = vmatprep.mubr.f32.mxu0 %v700_v51 }
 0x2a8   :  { %1416 = vmatmul.mubr.f32.gmra.mrb[22].mxu0 %v1373_v49 }
 0x2a9   :  { %1434 = vmatprep.mubr.msk.f32.mxu0 %vm243_vm3, %v1901_v38  ;;  %v1578_v38 = vpack.c.bf16 %v986_v19, %v985_v18 }
 0x2ab   :  { %1579 = vmatprep.subr.bf16.mxu1 %v1578_v38 }
 0x2ac   :  { %1581 = vmatpush3.bf16.msra.mxu1 %v1578_v38 }
 0x2ad   :  { %1583 = vmatprep.subr.bf16.mxu1 %v1582_v22 }
 0x2b0   :  { %1585 = vmatpush3.bf16.msra.mxu1 %v1582_v22 }
 0x2b1   :  { %1587 = vmatprep.subr.bf16.mxu1 %v1586_v24 }
 0x2b4   :  { %1589 = vmatpush3.bf16.msra.mxu1 %v1586_v24 }
 0x2b5   :  { %1591 = vmatprep.subr.bf16.mxu1 %v1590_v29 }
 0x2b8   :  { %1593 = vmatpush3.bf16.msra.mxu1 %v1590_v29 }
 0x36f   :  { %v1408_v4 = vpop.f32.mrb[16].mxu0 }
 0x370   :  { %v832_v30 = vadd.f32 %v1408_v4, %v1983_v56  ;;  %v792_v5 = vpop.f32.mrb[17].mxu0 }
 0x371   :  { %v831_v6 = vadd.f32 %v792_v5, %v1974_v46 }
 0x372   :  { %v840_v7 = vmax.f32 %v832_v30, 0.0 }
 0x373   :  { %v839_v33 = vmax.f32 %v831_v6, 0.0  ;;  %v1411_v35 = vpop.f32.mrb[18].mxu0 }
 0x374   :  { %v834_v43 = vadd.f32 %v1411_v35, %v1999_v16  ;;  %v802_v45 = vpop.f32.mrb[19].mxu0 }
 0x375   :  { %v1546_v8 = vpack.c.bf16 %v840_v7, %v839_v33  ;;  %v833_v9 = vadd.f32 %v802_v45, %v1990_v36 }
 0x376   :  { %v842_v10 = vmax.f32 %v834_v43, 0.0 }
 0x377   :  { %v841_v11 = vmax.f32 %v833_v9, 0.0  ;;  %v1414_v39 = vpop.f32.mrb[20].mxu0  ;;  %1547 = vmatprep.subr.bf16.mxu0 %v1546_v8 }
 0x378   :  { %v836_v40 = vadd.f32 %v1414_v39, %v2015_v25  ;;  %v812_v49 = vpop.f32.mrb[21].mxu0  ;;  %1549 = vmatpush3.bf16.msra.mxu0 %v1546_v8 }
 0x379   :  { %v1550_v56 = vpack.c.bf16 %v842_v10, %v841_v11  ;;  %v835_v46 = vadd.f32 %v812_v49, %v2011_v3 }
 0x37a   :  { %v844_v51 = vmax.f32 %v836_v40, 0.0 }
 0x37b   :  { %v843_v52 = vmax.f32 %v835_v46, 0.0  ;;  %v1417_v55 = vpop.f32.mrb[22].mxu0  ;;  %1551 = vmatprep.subr.bf16.mxu0 %v1550_v56 }
 0x37c   :  { %v838_v16 = vadd.f32 %v1417_v55, %v2031_v34  ;;  %v822_v62 = vpop.f32.mrb[23].mxu0  ;;  %1553 = vmatpush3.bf16.msra.mxu0 %v1550_v56 }
 0x37d   :  { %v1554_v36 = vpack.c.bf16 %v844_v51, %v843_v52  ;;  %v837_v37 = vadd.f32 %v822_v62, %v2027_v32 }
 0x37e   :  { %v846_v1 = vmax.f32 %v838_v16, 0.0 }
 0x37f   :  { %v845_v2 = vmax.f32 %v837_v37, 0.0  ;;  %1555 = vmatprep.subr.bf16.mxu0 %v1554_v36 }
 0x380   :  { %1557 = vmatpush3.bf16.msra.mxu0 %v1554_v36 }
 0x381   :  { %v1558_v25 = vpack.c.bf16 %v846_v1, %v845_v2 }
 0x383   :  { %1559 = vmatprep.subr.bf16.mxu0 %v1558_v25 }
 0x384   :  { %1561 = vmatpush3.bf16.msra.mxu0 %v1558_v25 }
 0x387   :  { %1435 = vmatmul.mubr.msk.f32.vlgmr.msra.gmra.mrb[24].mxu0 %vm243_vm3, %v1907_v41 }
 0x388   :  { %1437 = vmatprep.mubr.msk.f32.mxu0 %vm243_vm3, %v1911_v44 }
 0x38b   :  { %1438 = vmatmul.mubr.msk.f32.gmra.mrb[26].mxu0 %vm243_vm3, %v1915_v47 }
 0x38c   :  { %1440 = vmatprep.mubr.msk.f32.mxu0 %vm243_vm3, %v1919_v50 }
 0x38f   :  { %1441 = vmatmul.mubr.msk.f32.gmra.mrb[28].mxu0 %vm243_vm3, %v1923_v53 }
 0x390   :  { %1443 = vmatprep.mubr.msk.f32.mxu0 %vm243_vm3, %v1935_v60  ;;  %v1231_v60 = vld [vmem:[%s2102_s5 + $0x2] ss:$0 sm:$0xff]  ;;  %s1669_s5 = smov [#allocation5]  }
 0x391   :  { %v855_v14 = vmul.f32 %v1231_v60, %v1969_v42  ;;  %v858_v18 = vmul.f32 %v1231_v60, %v1992_v13  ;;  %v857_v20 = vmul.f32 %v1231_v60, %v1985_v61  ;;  %v859_v26 = vmul.f32 %v1231_v60, %v2001_v17  ;;  %s1127_s20 = sshll.u32 %s1669_s5, 4  ;;  %s1128_s20 = int_to_ptr.vmem [resolvable:$true] %s1127_s20 }
 0x392   :  { %v862_v4 = vmul.f32 %v1231_v60, %v2021_v31  ;;  %v861_v30 = vmul.f32 %v1231_v60, %v2017_v28  ;;  %s1638_s1 = scalar_lea.vmem %s1128_s20, 1024  ;;  %p1643_p9 = scmp.lt.s32.totalorder %s1128_s20, %s1128_s20 }
 0x393   :  { %1444 = vmatmul.mubr.msk.f32.gmra.mrb[30].mxu0 %vm243_vm3, %v1939_v63  ;;  %v856_v63 = vmul.f32 %v1231_v60, %v1976_v48  ;;  %v860_v48 = vmul.f32 %v1231_v60, %v2005_v58  ;;  %p1639_p8 = scmp.ne.s32.totalorder %s1128_s20, %s1638_s1  ;;  %p1644_p10 = scmp.lt.s32.totalorder %s1638_s1, %s1638_s1 }
 0x395   :  { %p1645_p11 = por %p1644_p10, %p1643_p9 }
 0x397   :  { %p1646_p12 = pnand %p1645_p11, %p1639_p8 }
 0x45a   :  { %v1436_v3 = vpop.f32.mrb[24].mxu0 }
 0x45b   :  { %v937_v41 = vpop.f32.mrb[25].mxu0 }
 0x45c   :  { %1478 = vmatprep.mubr.f32.mxu1 %v937_v41 }
 0x45d   :  { %1479 = vmatmul.mubr.f32.vlgmr.msra.gmra.mrb[16].mxu1 %v1436_v3 }
 0x45e   :  { %v1439_v44 = vpop.f32.mrb[26].mxu0 }
 0x45f   :  { %v947_v32 = vpop.f32.mrb[27].mxu0 }
 0x460   :  { %1481 = vmatprep.mubr.f32.mxu1 %v947_v32 }
 0x461   :  { %1482 = vmatmul.mubr.f32.gmra.mrb[18].mxu1 %v1439_v44 }
 0x462   :  { %v1442_v47 = vpop.f32.mrb[28].mxu0 }
 0x463   :  { %v957_v34 = vpop.f32.mrb[29].mxu0 }
 0x464   :  { %1484 = vmatprep.mubr.f32.mxu1 %v957_v34 }
 0x465   :  { %1485 = vmatmul.mubr.f32.gmra.mrb[20].mxu1 %v1442_v47 }
 0x466   :  { %v1445_v50 = vpop.f32.mrb[30].mxu0 }
 0x467   :  { %v967_v53 = vpop.f32.mrb[31].mxu0 }
 0x468   :  { %1487 = vmatprep.mubr.f32.mxu1 %v967_v53 }
 0x469   :  { %1488 = vmatmul.mubr.f32.gmra.mrb[22].mxu1 %v1445_v50 }
 0x530   :  { %v1480_v12 = vpop.f32.mrb[16].mxu1 }
 0x531   :  { %v1594_v54 = vadd.f32 %v1480_v12, %v856_v63  ;;  %v1059_v57 = vpop.f32.mrb[17].mxu1 }
 0x532   :  { %v1595_v15 = vadd.f32 %v1059_v57, %v855_v14 }
 0x533   :  { %v1107_v59 = vmax.f32 %v1594_v54, 0.0 }
 0x534   :  { %v1106_v19 = vmax.f32 %v1595_v15, 0.0  ;;  %v1483_v38 = vpop.f32.mrb[18].mxu1 }
 0x535   :  { %1115 = vst [vmem:[#allocation5 + $0x8] sm:$0xff] %v1107_v59  ;;  %v1596_v21 = vadd.f32 %v1483_v38, %v858_v18  ;;  %v1069_v22 = vpop.f32.mrb[19].mxu1 }
 0x536   :  { %1114 = vst [vmem:[#allocation5] sm:$0xff] %v1106_v19  ;;  %v1597_v23 = vadd.f32 %v1069_v22, %v857_v20 }
 0x537   :  { %v1109_v0 = vmax.f32 %v1596_v21, 0.0 }
 0x538   :  { %v1108_v24 = vmax.f32 %v1597_v23, 0.0  ;;  %v1486_v42 = vpop.f32.mrb[20].mxu1 }
 0x539   :  { %1117 = vst [vmem:[#allocation5 + $0x18] sm:$0xff] %v1109_v0  ;;  %v1598_v27 = vadd.f32 %v1486_v42, %v860_v48  ;;  %v1079_v29 = vpop.f32.mrb[21].mxu1 }
 0x53a   :  { %1116 = vst [vmem:[#allocation5 + $0x10] sm:$0xff] %v1108_v24  ;;  %v1599_v13 = vadd.f32 %v1079_v29, %v859_v26 }
 0x53b   :  { %v1111_v61 = vmax.f32 %v1598_v27, 0.0 }
 0x53c   :  { %v1110_v5 = vmax.f32 %v1599_v13, 0.0  ;;  %v1489_v6 = vpop.f32.mrb[22].mxu1 }
 0x53d   :  { %1119 = vst [vmem:[#allocation5 + $0x28] sm:$0xff] %v1111_v61  ;;  %v1600_v7 = vadd.f32 %v1489_v6, %v862_v4  ;;  %v1089_v33 = vpop.f32.mrb[23].mxu1 }
 0x53e   :  { %1118 = vst [vmem:[#allocation5 + $0x20] sm:$0xff] %v1110_v5  ;;  %v1601_v58 = vadd.f32 %v1089_v33, %v861_v30 }
 0x53f   :  { %v1113_v17 = vmax.f32 %v1600_v7, 0.0 }
 0x540   :  { %v1112_v35 = vmax.f32 %v1601_v58, 0.0 }
 0x541   :  { %1121 = vst [vmem:[#allocation5 + $0x38] sm:$0xff] %v1113_v17 }
 0x542   :  { %1120 = vst [vmem:[#allocation5 + $0x30] sm:$0xff] %v1112_v35 }
 0x543   :  { %1649 = shalt.err (!%p1646_p12)
}
 0x544   :  { %s1650_s23 = scalar_lea.hbm %s2103_s6, 1024 }
 0x545   :  { %p1651_p13 = scmp.ne.s32.totalorder %s2103_s6, %s1650_s23  ;;  %p1654_p0 = scmp.lt.u32.totalorder %s1650_s23, %s2103_s6 }
 0x547   :  { %p1656_p1 = pnand %p1654_p0, %p1651_p13 }
 0x549   :  { %1659 = shalt.err (!%p1656_p1)
}
 0x54a   :  { %1133 = dma.vmem_to_hbm [thread:$0]  %s1128_s20, 1024, %s2103_s6, [#allocation4], %s1665_s7, %s1665_s7, %s1666_s8  }
 0x54b   :  { %1662 = dma.done.wait [#allocation4], 1024  }
 0x54c   :  { %1663 = vsyncadd [#allocation4], 4294966272 }
 0x54d   :  { %1137 = vsyncpa [#allocation3], 1 }
 0x54e   :  { %1138 = vsyncpa [#allocation4], 1 }

</bundles_post_ra>
